<compile_context>
chip_gen: v6e
topology: v6e:2x2x1
jax: 0.10.0
libtpu: 0.0.40
codegen_flags: <defaults>
</compile_context>

<pallas_src>
import functools

import jax
import jax.numpy as jnp
from jax.experimental import pallas as pl
from jax.experimental.pallas import tpu as pltpu

_LANE = 128
_SUBLANE = 8
_BN_EPS = 1e-5


def _round_up(n, m):
    return ((n + m - 1) // m) * m


# ---------------------------------------------------------------------------
# Fused kernel: x -> [Linear(+folded BN) -> ReLU]* -> Linear -> out
# All weights/biases are VMEM-resident (constant index maps); activations stay
# in vregs/VMEM between layers; only the final (tb, out_dim) result hits HBM.
# ---------------------------------------------------------------------------
def _fused_mlp_kernel(*refs, relu_flags, compute_dtype):
    x_ref = refs[0]
    o_ref = refs[-1]
    prefs = refs[1:-1]

    h = x_ref[...].astype(compute_dtype)          # cast on the tile, in-kernel
    n_layers = len(relu_flags)
    for li, apply_relu in enumerate(relu_flags):
        w_ref = prefs[2 * li]
        b_ref = prefs[2 * li + 1]
        y = jnp.dot(h, w_ref[...], preferred_element_type=jnp.float32)
        y = y + b_ref[...]                        # f32 bias add (v5e-safe VPU path)
        if apply_relu:
            y = jnp.maximum(y, 0.0)
        if li < n_layers - 1:
            h = y.astype(compute_dtype)
        else:
            o_ref[...] = y.astype(o_ref.dtype)
    # TODO(synk): training-mode Dropout (stochastic mask) and BN batch-statistics
    # update are not emitted; both are identity / unused in eval-mode forward.


def _pick_batch_tile(batch, batch_tile):
    """Batch tile: whole batch for small inputs; otherwise a 128-multiple tile
    capped so the grid has >= 2 steps (v7x megacore sharding)."""
    if batch <= 2 * _LANE:
        return batch                              # block dim == full array dim: legal
    tb = min(batch_tile, _round_up(-(-batch // 2), _LANE))
    return max(_round_up(tb, _SUBLANE), _LANE)


# ---------------------------------------------------------------------------
# Wrapper: BN fold + batch tiling + single pallas_call
# ---------------------------------------------------------------------------
def multilayer_perceptron(x, hidden_params, out_params, *,
                          compute_dtype=jnp.bfloat16, batch_tile=512):
    """Fused eval-mode MLP forward. Returns (batch, 1) f32 when an output layer
    is present, else (batch, last_hidden_dim) f32."""
    batch, din = x.shape

    # --- Fold BN(eval) into the hidden Linears (in f32), cast weights. ------
    folded = []          # [(w, b), ...] in layer order
    relu_flags = []
    out_dim = din
    for p in hidden_params:
        scale = p["gamma"] * jax.lax.rsqrt(p["var"] + _BN_EPS)      # (1, dout)
        shift = p["beta"] - p["mean"] * scale
        w = (p["w"] * scale).astype(compute_dtype)                  # (din_l, dout)
        b = (p["b"] * scale + shift).astype(jnp.float32)            # (1, dout)
        folded.append((w, b))
        relu_flags.append(True)
        out_dim = p["w"].shape[1]
    if out_params is not None:
        folded.append((out_params["w"].astype(compute_dtype),
                       out_params["b"].astype(jnp.float32)))
        relu_flags.append(False)
        out_dim = out_params["w"].shape[1]

    if not folded:                                 # no layers at all: identity
        return x

    # --- Batch tiling (no padding materialized; Pallas masks edge blocks). --
    tb = _pick_batch_tile(batch, batch_tile)
    grid = (pl.cdiv(batch, tb),)

    # --- BlockSpecs: x / out tiled over batch, params resident (full-array). -
    in_specs = [pl.BlockSpec((tb, din), lambda i: (i, 0))]
    flat_params = []
    for w, b in folded:
        in_specs.append(pl.BlockSpec(w.shape, lambda i: (0, 0)))
        in_specs.append(pl.BlockSpec(b.shape, lambda i: (0, 0)))
        flat_params.extend([w, b])
    out_spec = pl.BlockSpec((tb, out_dim), lambda i: (i, 0))

    # --- Scheduler hint and VMEM budget from TRUE (unpadded) dims. -----------
    flops = 0
    param_bytes = 0
    max_width = 1
    for w, b in folded:
        flops += 2 * batch * w.shape[0] * w.shape[1]
        param_bytes += w.size * w.dtype.itemsize + b.size * b.dtype.itemsize
        max_width = max(max_width, w.shape[1])
    bytes_accessed = (x.size * x.dtype.itemsize + param_bytes
                      + batch * out_dim * 4)

    x_tile_bytes = tb * din * x.dtype.itemsize
    out_tile_bytes = tb * out_dim * 4
    act_bytes = tb * max_width * 4
    vmem_need = 2 * (x_tile_bytes + out_tile_bytes + param_bytes) + 4 * act_bytes
    vmem_limit = int(min(max(32 << 20, 2 * vmem_need), 48 << 20))   # v7x-safe cap

    kernel = functools.partial(_fused_mlp_kernel,
                               relu_flags=tuple(relu_flags),
                               compute_dtype=compute_dtype)

    return pl.pallas_call(
        kernel,
        out_shape=jax.ShapeDtypeStruct((batch, out_dim), jnp.float32),
        grid=grid,
        in_specs=in_specs,
        out_specs=out_spec,
        compiler_params=pltpu.CompilerParams(
            dimension_semantics=("parallel",),      # shard batch tiles over TCs
            vmem_limit_bytes=vmem_limit,
        ),
        cost_estimate=pl.CostEstimate(flops=flops, transcendentals=0,
                                      bytes_accessed=bytes_accessed),
    )(x, *flat_params)


# ---------------------------------------------------------------------------
# Parameter construction (deterministic, mimics torch.nn.Linear default init)
# ---------------------------------------------------------------------------
def init_mlp_params(key, input_dim, embed_dims, output_layer=True):
    params = []
    din = input_dim
    for dout in embed_dims:
        key, kw, kb = jax.random.split(key, 3)
        bound = 1.0 / jnp.sqrt(din)
        w = jax.random.uniform(kw, (din, dout), jnp.float32, -bound, bound)
        b = jax.random.uniform(kb, (1, dout), jnp.float32, -bound, bound)
        params.append(dict(w=w, b=b,
                           gamma=jnp.ones((1, dout), jnp.float32),
                           beta=jnp.zeros((1, dout), jnp.float32),
                           mean=jnp.zeros((1, dout), jnp.float32),
                           var=jnp.ones((1, dout), jnp.float32)))
        din = dout
    out = None
    if output_layer:
        key, kw, kb = jax.random.split(key, 3)
        bound = 1.0 / jnp.sqrt(din)
        w = jax.random.uniform(kw, (din, 1), jnp.float32, -bound, bound)
        b = jax.random.uniform(kb, (1, 1), jnp.float32, -bound, bound)
        out = dict(w=w, b=b)
    return params, out


# ---------------------------------------------------------------------------
# Demo / smoke test
# ---------------------------------------------------------------------------
if __name__ == "__main__":
    key = jax.random.PRNGKey(0)
    input_dim = 32
    embed_dims = (64, 32)
    dropout = 0.2  # identity in eval mode

    key, kp = jax.random.split(key)
    hidden_params, out_params = init_mlp_params(kp, input_dim, embed_dims,
                                                output_layer=True)

    # Pure-JAX reference (unfolded Linear -> BN(eval) -> ReLU -> ... -> Linear).
    def ref(x):
        h = x
        for p in hidden_params:
            h = h @ p["w"] + p["b"]
            h = (h - p["mean"]) * jax.lax.rsqrt(p["var"] + _BN_EPS) * p["gamma"] + p["beta"]
            h = jnp.maximum(h, 0.0)
        if out_params is not None:
            h = h @ out_params["w"] + out_params["b"]
        return h

    for batch in (8, 300):   # 8: single block; 300: grid=2 with a partial edge block
        key, kx = jax.random.split(key)
        x = jax.random.normal(kx, (batch, input_dim), jnp.float32)
        y_ref = ref(x)

        # f32 matmul path: tight check of the fused-kernel math / BN fold / tiling.
        y_f32 = jax.block_until_ready(
            multilayer_perceptron(x, hidden_params, out_params,
                                  compute_dtype=jnp.float32))
        assert y_f32.shape == (batch, 1), y_f32.shape
        assert jnp.allclose(y_f32, y_ref, atol=1e-4, rtol=1e-4), \
            f"f32 mismatch vs reference (batch={batch})"

        # bf16 matmul inputs / f32 accumulation: the fast MXU path on v6e/v7x.
        y_bf16 = jax.block_until_ready(
            multilayer_perceptron(x, hidden_params, out_params,
                                  compute_dtype=jnp.bfloat16))
        assert y_bf16.shape == (batch, 1), y_bf16.shape
        assert jnp.allclose(y_bf16, y_ref, atol=5e-2, rtol=5e-2), \
            f"bf16 mismatch vs reference (batch={batch})"

    print("KERNEL_OK")
</pallas_src>

<mosaic_0001>
module attributes {stable_mosaic.version = 11 : i64} {
  func.func @_fused_mlp_kernel(%arg0: i32, %arg1: memref<8x32xf32, #tpu.memory_space<vmem>>, %arg2: memref<32x64xf32, #tpu.memory_space<vmem>>, %arg3: memref<1x64xf32, #tpu.memory_space<vmem>>, %arg4: memref<64x32xf32, #tpu.memory_space<vmem>>, %arg5: memref<1x32xf32, #tpu.memory_space<vmem>>, %arg6: memref<32x1xf32, #tpu.memory_space<vmem>>, %arg7: memref<1x1xf32, #tpu.memory_space<vmem>>, %arg8: memref<8x1xf32, #tpu.memory_space<vmem>>) attributes {dimension_semantics = [#tpu.dimension_semantics<parallel>], iteration_bounds = array<i64: 1>, scalar_prefetch = 0 : i64, scratch_operands = 0 : i64, tpu.core_type = #tpu.core_type<tc>, window_params = [{transform_indices = @transform_0, window_bounds = array<i64: 8, 32>}, {pipeline_mode = #tpu.pipeline_mode<synchronous>, transform_indices = @transform_1, window_bounds = array<i64: 32, 64>}, {pipeline_mode = #tpu.pipeline_mode<synchronous>, transform_indices = @transform_2, window_bounds = array<i64: 1, 64>}, {pipeline_mode = #tpu.pipeline_mode<synchronous>, transform_indices = @transform_3, window_bounds = array<i64: 64, 32>}, {pipeline_mode = #tpu.pipeline_mode<synchronous>, transform_indices = @transform_4, window_bounds = array<i64: 1, 32>}, {pipeline_mode = #tpu.pipeline_mode<synchronous>, transform_indices = @transform_5, window_bounds = array<i64: 32, 1>}, {pipeline_mode = #tpu.pipeline_mode<synchronous>, transform_indices = @transform_6, window_bounds = array<i64: 1, 1>}, {transform_indices = @transform_7, window_bounds = array<i64: 8, 1>}]} {
    %c0 = arith.constant 0 : index
    %c0_0 = arith.constant 0 : index
    %0 = vector.load %arg1[%c0, %c0_0] : memref<8x32xf32, #tpu.memory_space<vmem>>, vector<8x32xf32>
    %c0_1 = arith.constant 0 : index
    %c0_2 = arith.constant 0 : index
    %1 = vector.load %arg2[%c0_1, %c0_2] : memref<32x64xf32, #tpu.memory_space<vmem>>, vector<32x64xf32>
    %cst = arith.constant dense<0.000000e+00> : vector<8x64xf32>
    %2 = tpu.matmul %0, %1, %cst {dimension_numbers = #tpu.dot_dimension_numbers<[1], [0], [0], [1], [0, 0, 1, 1], [], []>} : vector<8x32xf32>, vector<32x64xf32>, vector<8x64xf32> -> vector<8x64xf32>
    %c0_3 = arith.constant 0 : index
    %c0_4 = arith.constant 0 : index
    %3 = vector.load %arg3[%c0_3, %c0_4] : memref<1x64xf32, #tpu.memory_space<vmem>>, vector<1x64xf32>
    %4 = vector.broadcast %3 : vector<1x64xf32> to vector<8x64xf32>
    %5 = arith.addf %2, %4 : vector<8x64xf32>
    %cst_5 = arith.constant 0.000000e+00 : f32
    %6 = vector.broadcast %cst_5 : f32 to vector<8x64xf32>
    %7 = arith.maximumf %5, %6 : vector<8x64xf32>
    %c0_6 = arith.constant 0 : index
    %c0_7 = arith.constant 0 : index
    %8 = vector.load %arg4[%c0_6, %c0_7] : memref<64x32xf32, #tpu.memory_space<vmem>>, vector<64x32xf32>
    %cst_8 = arith.constant dense<0.000000e+00> : vector<8x32xf32>
    %9 = tpu.matmul %7, %8, %cst_8 {dimension_numbers = #tpu.dot_dimension_numbers<[1], [0], [0], [1], [0, 0, 1, 1], [], []>} : vector<8x64xf32>, vector<64x32xf32>, vector<8x32xf32> -> vector<8x32xf32>
    %c0_9 = arith.constant 0 : index
    %c0_10 = arith.constant 0 : index
    %10 = vector.load %arg5[%c0_9, %c0_10] : memref<1x32xf32, #tpu.memory_space<vmem>>, vector<1x32xf32>
    %11 = vector.broadcast %10 : vector<1x32xf32> to vector<8x32xf32>
    %12 = arith.addf %9, %11 : vector<8x32xf32>
    %cst_11 = arith.constant 0.000000e+00 : f32
    %13 = vector.broadcast %cst_11 : f32 to vector<8x32xf32>
    %14 = arith.maximumf %12, %13 : vector<8x32xf32>
    %c0_12 = arith.constant 0 : index
    %c0_13 = arith.constant 0 : index
    %15 = vector.load %arg6[%c0_12, %c0_13] : memref<32x1xf32, #tpu.memory_space<vmem>>, vector<32x1xf32>
    %cst_14 = arith.constant dense<0.000000e+00> : vector<8x1xf32>
    %16 = tpu.matmul %14, %15, %cst_14 {dimension_numbers = #tpu.dot_dimension_numbers<[1], [0], [0], [1], [0, 0, 1, 1], [], []>} : vector<8x32xf32>, vector<32x1xf32>, vector<8x1xf32> -> vector<8x1xf32>
    %c0_15 = arith.constant 0 : index
    %c0_16 = arith.constant 0 : index
    %17 = vector.load %arg7[%c0_15, %c0_16] : memref<1x1xf32, #tpu.memory_space<vmem>>, vector<1x1xf32>
    %18 = vector.broadcast %17 : vector<1x1xf32> to vector<8x1xf32>
    %19 = arith.addf %16, %18 : vector<8x1xf32>
    %c0_17 = arith.constant 0 : index
    %c0_18 = arith.constant 0 : index
    %20 = vector.load %arg8[%c0_17, %c0_18] : memref<8x1xf32, #tpu.memory_space<vmem>>, vector<8x1xf32>
    tpu.vector_store %arg8[%c0_17, %c0_18], %19 {strides = array<i32>} : memref<8x1xf32, #tpu.memory_space<vmem>>, vector<8x1xf32>,
    return
  }
  func.func @transform_0(%arg0: i32) -> (i32, i32) {
    %c0_i32 = arith.constant 0 : i32
    %c0_i32_0 = arith.constant 0 : i32
    return %arg0, %c0_i32 : i32, i32
  }
  func.func @transform_1(%arg0: i32) -> (i32, i32) {
    %c0_i32 = arith.constant 0 : i32
    %c0_i32_0 = arith.constant 0 : i32
    %c0_i32_1 = arith.constant 0 : i32
    return %c0_i32, %c0_i32_0 : i32, i32
  }
  func.func @transform_2(%arg0: i32) -> (i32, i32) {
    %c0_i32 = arith.constant 0 : i32
    %c0_i32_0 = arith.constant 0 : i32
    %c0_i32_1 = arith.constant 0 : i32
    return %c0_i32, %c0_i32_0 : i32, i32
  }
  func.func @transform_3(%arg0: i32) -> (i32, i32) {
    %c0_i32 = arith.constant 0 : i32
    %c0_i32_0 = arith.constant 0 : i32
    %c0_i32_1 = arith.constant 0 : i32
    return %c0_i32, %c0_i32_0 : i32, i32
  }
  func.func @transform_4(%arg0: i32) -> (i32, i32) {
    %c0_i32 = arith.constant 0 : i32
    %c0_i32_0 = arith.constant 0 : i32
    %c0_i32_1 = arith.constant 0 : i32
    return %c0_i32, %c0_i32_0 : i32, i32
  }
  func.func @transform_5(%arg0: i32) -> (i32, i32) {
    %c0_i32 = arith.constant 0 : i32
    %c0_i32_0 = arith.constant 0 : i32
    %c0_i32_1 = arith.constant 0 : i32
    return %c0_i32, %c0_i32_0 : i32, i32
  }
  func.func @transform_6(%arg0: i32) -> (i32, i32) {
    %c0_i32 = arith.constant 0 : i32
    %c0_i32_0 = arith.constant 0 : i32
    %c0_i32_1 = arith.constant 0 : i32
    return %c0_i32, %c0_i32_0 : i32, i32
  }
  func.func @transform_7(%arg0: i32) -> (i32, i32) {
    %c0_i32 = arith.constant 0 : i32
    %c0_i32_0 = arith.constant 0 : i32
    return %arg0, %c0_i32 : i32, i32
  }
}

</mosaic_0001>

<bundles_post_ra>
// kernel: tpu_custom_call.1
= control target key start
LH: loop header
LB: loop body
LE: loop exit
PB: predicated region body
PF: predicated region fallthrough
CT: control target
= control target key end

     0   :  { %v363_v0 = vmov 0.0   ;;  %vm364_vm0 = vmmov 0   ;;  %vm40_vm1 = vcmask 261120   ;;  %vm130_vm2 = vcmask 523264   ;;  %s473_s1 = inlined_call_operand.vmem [shape: f32[32,64], index: 1, kind: input, shape index: {}]   ;;  %s474_s3 = inlined_call_operand.vmem [shape: f32[64,32], index: 3, kind: input, shape index: {}]   ;;  %s475_s0 = inlined_call_operand.vmem [shape: f32[8,32], index: 0, kind: input, shape index: {}]   ;;  %s476_s5 = inlined_call_operand.vmem [shape: f32[32,1], index: 5, kind: input, shape index: {}]   ;;  %s477_s2 = inlined_call_operand.vmem [shape: f32[1,64], index: 2, kind: input, shape index: {}]   ;;  %s478_s6 = inlined_call_operand.<no memory space> [shape: f32[1,1], index: 6, kind: input, shape index: {}]   ;;  %s479_s4 = inlined_call_operand.vmem [shape: f32[1,32], index: 4, kind: input, shape index: {}]   ;;  %s480_s7 = inlined_call_operand.vmem [shape: f32[8,1], index: 7, kind: output, shape index: {}]  }
   0x1   :  { %320 = vmatprep.subr.mxu0 %v363_v0  ;;  %v32_v1 = vld [vmem:[%s473_s1 + $0x18] sm:$0xff]  ;;  %v31_v2 = vld [vmem:[%s473_s1 + $0x10] sm:$0xff]  ;;  %328 = vmatprep.mubr.msk.f32.mxu0 %vm364_vm0, %v363_v0  ;;  %v30_v4 = vld [vmem:[%s473_s1 + $0x8] sm:$0xff]  ;;  %v12_v23 = vstv %s478_s6  ;;  %vm289_vm3 = vcmask 7168  }
   0x2   :  { %321 = vmatpush3.msra.mxu0 %v32_v1  ;;  %331 = vmatprep.subr.mxu1 %v363_v0  ;;  %v122_v3 = vld [vmem:[%s474_s3 + $0x38] sm:$0xff]  ;;  %v121_v5 = vld [vmem:[%s474_s3 + $0x30] sm:$0xff]  ;;  %v120_v6 = vld [vmem:[%s474_s3 + $0x28] sm:$0xff]  ;;  %13 = vst [vmem:[#allocation2] sm:$0x1] %v12_v23 }
   0x3   :  { %322 = vmatprep.subr.mxu0 %v363_v0  ;;  %332 = vmatpush3.msra.mxu1 %v122_v3  ;;  %v29_v7 = vld [vmem:[%s473_s1] sm:$0xff]  ;;  %v118_v10 = vld [vmem:[%s474_s3 + $0x18] sm:$0xff]  ;;  %v117_v11 = vld [vmem:[%s474_s3 + $0x10] sm:$0xff] }
   0x4   :  { %323 = vmatpush3.msra.mxu0 %v31_v2  ;;  %333 = vmatprep.subr.mxu1 %v363_v0  ;;  %v28_v8 = vld [vmem:[%s475_s0] sm:$0xff]  ;;  %v116_v12 = vld [vmem:[%s474_s3 + $0x8] sm:$0xff]  ;;  %v208_v14 = vld [vmem:[%s476_s5 + $0x18] sm:$0xff] }
   0x5   :  { %324 = vmatprep.subr.mxu0 %v363_v0  ;;  %334 = vmatpush3.msra.mxu1 %v121_v5  ;;  %v119_v9 = vld [vmem:[%s474_s3 + $0x20] sm:$0xff]  ;;  %v207_v20 = vld [vmem:[%s476_s5 + $0x10] sm:$0xff]  ;;  %v206_v21 = vld [vmem:[%s476_s5 + $0x8] sm:$0xff] }
   0x6   :  { %325 = vmatpush3.msra.mxu0 %v30_v4  ;;  %335 = vmatprep.subr.mxu1 %v363_v0  ;;  %v115_v13 = vld [vmem:[%s474_s3] sm:$0xff] }
   0x7   :  { %326 = vmatprep.subr.mxu0 %v363_v0  ;;  %336 = vmatpush3.msra.mxu1 %v120_v6  ;;  %v295_v15 = vld [vmem:[%s477_s2] ss:$0 sm:$0xff] }
   0x8   :  { %327 = vmatpush3.msra.mxu0 %v29_v7  ;;  %337 = vmatprep.subr.mxu1 %v363_v0  ;;  %v205_v22 = vld [vmem:[%s476_s5] sm:$0xff] }
   0x9   :  { %329 = vmatmul.mubr.msk.f32.vlgmr.msra.gmra.mxu0 %vm40_vm1, %v28_v8  ;;  %338 = vmatpush3.msra.mxu1 %v119_v9  ;;  %v297_v24 = vld [vmem:[%s479_s4] ss:$0 sm:$0xff] }
   0xa   :  { %339 = vmatprep.subr.mxu1 %v363_v0  ;;  %347 = vmatprep.mubr.msk.f32.mxu1 %vm364_vm0, %v363_v0  ;;  %v299_v29 = vld [vmem:[#allocation2] ss:$0 sm:$0xff] }
   0xb   :  { %340 = vmatpush3.msra.mxu1 %v118_v10  ;;  %350 = vmatprep.subr.mxu0 %v363_v0 }
   0xc   :  { %341 = vmatprep.subr.mxu1 %v363_v0  ;;  %358 = vmatprep.mubr.msk.f32.mxu0 %vm364_vm0, %v363_v0 }
   0xd   :  { %342 = vmatpush3.msra.mxu1 %v117_v11  ;;  %351 = vmatpush3.msra.mxu0 %v208_v14 }
   0xe   :  { %343 = vmatprep.subr.mxu1 %v363_v0  ;;  %352 = vmatprep.subr.mxu0 %v363_v0 }
   0xf   :  { %344 = vmatpush3.msra.mxu1 %v116_v12  ;;  %353 = vmatpush3.msra.mxu0 %v207_v20 }
  0x10   :  { %345 = vmatprep.subr.mxu1 %v363_v0  ;;  %354 = vmatprep.subr.mxu0 %v363_v0 }
  0x11   :  { %346 = vmatpush3.msra.mxu1 %v115_v13  ;;  %355 = vmatpush3.msra.mxu0 %v206_v21 }
  0x12   :  { %356 = vmatprep.subr.mxu0 %v363_v0 }
  0x13   :  { %357 = vmatpush3.msra.mxu0 %v205_v22 }
  0xc9   :  { %v110_v16 = vpop.f32.mrf.mxu0 }
  0xca   :  { %v111_v17 = vadd.f32 %v295_v15, %v110_v16 }
  0xcb   :  { %v330_v18 = vpop.f32.mrf.mxu0 }
  0xcc   :  { %v114_v19 = vmax.f32 %v111_v17, 0.0 }
  0xce   :  { %348 = vmatmul.mubr.msk.f32.vlgmr.msra.gmra.mxu1 %vm130_vm2, %v114_v19 }
 0x18e   :  { %v200_v25 = vpop.f32.mrf.mxu1 }
 0x18f   :  { %v201_v26 = vadd.f32 %v297_v24, %v200_v25 }
 0x190   :  { %v349_v27 = vpop.f32.mrf.mxu1 }
 0x191   :  { %v204_v28 = vmax.f32 %v201_v26, 0.0 }
 0x193   :  { %359 = vmatmul.mubr.msk.f32.vlgmr.msra.gmra.mxu0 %vm40_vm1, %v204_v28 }
 0x253   :  { %v285_v30 = vpop.f32.mrf.mxu0 }
 0x254   :  { %v286_v31 = vadd.f32 %v299_v29, %v285_v30 }
 0x255   :  { %v360_v32 = vpop.f32.mrf.mxu0 }
 0x256   :  { %290 = vst.msk [vmem:[%s480_s7] sm:$0xff] %vm289_vm3, %v286_v31 }

</bundles_post_ra>
